<compile_context>
chip_gen: v5e
topology: v5e:2x2
jax: 0.10.0
libtpu: 0.0.40
codegen_flags: <defaults>
</compile_context>

<pallas_src>
import jax
import jax.numpy as jnp
from jax.experimental import pallas as pl
from jax.experimental.pallas import tpu as pltpu

_MIB = 1024 * 1024


def _round_up(x: int, m: int) -> int:
    return ((x + m - 1) // m) * m


def _choose_tm(n: int, cap: int = 512) -> int:
    """Sublane-aligned row tile; prefer >= 2 row blocks (megacore) when possible."""
    n8 = _round_up(max(n, 1), 8)
    tm = min(n8, cap)
    if n8 // tm < 2 and n8 >= 16:
        tm = _round_up(-(-n8 // 2), 8)
    return tm


# -----------------------------------------------------------------------------
# Primary kernel: weights resident in VMEM, layer loop fully unrolled in-kernel.
# -----------------------------------------------------------------------------
def _mlp_resident_kernel(x_ref, w_ref, b_ref, o_ref, act_ref):
    # x_ref  : (tm, P)    f32  current row-block of the padded input
    # w_ref  : (L, P, P)  bf16 full weight stack (constant block -> DMA'd once)
    # b_ref  : (L, 1, P)  f32  full bias stack   (constant block -> DMA'd once)
    # o_ref  : (tm, P)    f32  padded output row-block
    # act_ref: (tm, P)    bf16 VMEM activation carried between layers
    nl = w_ref.shape[0]
    wt = w_ref.dtype

    # Layer 0 reads the input block directly (no act_ref copy).
    h = jnp.dot(x_ref[...].astype(wt), w_ref[0],
                preferred_element_type=jnp.float32) + b_ref[0]

    # Layers 1 .. nl-1.  L is static, so this Python loop is the fully-unrolled
    # equivalent of lax.fori_loop(..., unroll=True): zero per-layer grid-step
    # overhead and zero per-layer DMA descriptors.
    for l in range(1, nl):
        act_ref[...] = jnp.maximum(h, 0.0).astype(act_ref.dtype)  # ReLU of prev layer
        h = jnp.dot(act_ref[...], w_ref[l],
                    preferred_element_type=jnp.float32) + b_ref[l]

    # Last layer: no ReLU.
    o_ref[...] = h.astype(o_ref.dtype)


# -----------------------------------------------------------------------------
# Fallback kernel (only when L*P*P does not fit VMEM): stream W_l per layer.
# TODO(synk): for very large models, flip the loop nest (layer-outer, rows
# inner with the full activation resident) so weights are streamed once total.
# -----------------------------------------------------------------------------
def _mlp_streamed_kernel(x_ref, w_ref, b_ref, o_ref, act_ref):
    layer = pl.program_id(1)
    last = pl.num_programs(1) - 1

    @pl.when(layer == 0)
    def _():
        act_ref[...] = x_ref[...].astype(act_ref.dtype)

    y = jnp.dot(act_ref[...], w_ref[0], preferred_element_type=jnp.float32)
    y = y + b_ref[0]

    @pl.when(layer != last)
    def _():
        act_ref[...] = jnp.maximum(y, 0.0).astype(act_ref.dtype)

    @pl.when(layer == last)
    def _():
        o_ref[...] = y.astype(o_ref.dtype)


# -----------------------------------------------------------------------------
# VMEM budgets (double-buffered inputs/outputs + scratch) and wrappers.
# -----------------------------------------------------------------------------
def _budget_resident(tm, p, nl, wbytes=2):
    return (2 * tm * p * 4            # x blocks
            + 2 * nl * p * p * wbytes  # resident weight stack (assume 2 bufs)
            + 2 * nl * p * 4           # bias stack
            + 2 * tm * p * 4           # output blocks
            + tm * p * wbytes)         # activation scratch


def _budget_streamed(tm, p, wbytes=2):
    return (2 * tm * p * 4 + 2 * p * p * wbytes + 2 * p * 4
            + 2 * tm * p * 4 + tm * p * wbytes)


def _vmem_limit(needed):
    return int(min(max(needed + 4 * _MIB, 16 * _MIB), 48 * _MIB))


def fused_mlp_resident(x_pad, w_stack, b_stack, *, tm, vmem_limit):
    n_pad, p = x_pad.shape
    nl = w_stack.shape[0]
    grid = (n_pad // tm,)

    flops = 2 * n_pad * p * p * nl
    bytes_accessed = int(x_pad.size * 4 + w_stack.size * 2 + b_stack.size * 4
                         + n_pad * p * 4)

    return pl.pallas_call(
        _mlp_resident_kernel,
        out_shape=jax.ShapeDtypeStruct((n_pad, p), jnp.float32),
        grid_spec=pltpu.PrefetchScalarGridSpec(
            num_scalar_prefetch=0,
            grid=grid,
            in_specs=[
                pl.BlockSpec((tm, p), lambda i: (i, 0)),        # x row-block
                pl.BlockSpec((nl, p, p), lambda i: (0, 0, 0)),  # full W stack (resident)
                pl.BlockSpec((nl, 1, p), lambda i: (0, 0, 0)),  # full b stack (resident)
            ],
            out_specs=pl.BlockSpec((tm, p), lambda i: (i, 0)),
            scratch_shapes=[pltpu.VMEM((tm, p), w_stack.dtype)],
        ),
        compiler_params=pltpu.CompilerParams(
            dimension_semantics=("parallel",),
            vmem_limit_bytes=vmem_limit,
        ),
        cost_estimate=pl.CostEstimate(
            flops=flops, transcendentals=0, bytes_accessed=bytes_accessed),
    )(x_pad, w_stack, b_stack)


def fused_mlp_streamed(x_pad, w_stack, b_stack, *, tm, vmem_limit):
    n_pad, p = x_pad.shape
    nl = w_stack.shape[0]
    nrb = n_pad // tm
    grid = (nrb, nl)

    flops = 2 * n_pad * p * p * nl
    # Weights/bias are re-streamed once per row block on this path.
    bytes_accessed = int(x_pad.size * 4 + nrb * (w_stack.size * 2 + b_stack.size * 4)
                         + n_pad * p * 4)

    return pl.pallas_call(
        _mlp_streamed_kernel,
        out_shape=jax.ShapeDtypeStruct((n_pad, p), jnp.float32),
        grid_spec=pltpu.PrefetchScalarGridSpec(
            num_scalar_prefetch=0,
            grid=grid,
            in_specs=[
                pl.BlockSpec((tm, p), lambda i, l: (i, 0)),
                pl.BlockSpec((1, p, p), lambda i, l: (l, 0, 0)),
                pl.BlockSpec((1, 1, p), lambda i, l: (l, 0, 0)),
            ],
            out_specs=pl.BlockSpec((tm, p), lambda i, l: (i, 0)),
            scratch_shapes=[pltpu.VMEM((tm, p), w_stack.dtype)],
        ),
        compiler_params=pltpu.CompilerParams(
            dimension_semantics=("parallel", "arbitrary"),
            vmem_limit_bytes=vmem_limit,
        ),
        cost_estimate=pl.CostEstimate(
            flops=flops, transcendentals=0, bytes_accessed=bytes_accessed),
    )(x_pad, w_stack, b_stack)


# -----------------------------------------------------------------------------
# Module mirror of the PyTorch MLP.
# -----------------------------------------------------------------------------
class MLPPallas:
    """Linear(in,h), num_layers x Linear(h,h), Linear(h,out); ReLU after every
    layer except the last.  Forward matches `MLP.forward` (x.view(-1, in))."""

    def __init__(self, input_dim, output_dim, hidden_units, num_layers, key):
        self.input_dim = input_dim
        self.output_dim = output_dim
        self.hidden_units = hidden_units
        self.num_layers = num_layers

        dims = ([(input_dim, hidden_units)]
                + [(hidden_units, hidden_units)] * num_layers
                + [(hidden_units, output_dim)])

        # Raw f32 params stored as (in, out) so the kernel computes x @ W + b,
        # matching torch.nn.Linear (x @ W_pt.T + b). PyTorch default init range.
        self.params = []
        for fan_in, fan_out in dims:
            key, kw, kb = jax.random.split(key, 3)
            bound = 1.0 / (fan_in ** 0.5)
            w = jax.random.uniform(kw, (fan_in, fan_out), jnp.float32,
                                   minval=-bound, maxval=bound)
            b = jax.random.uniform(kb, (fan_out,), jnp.float32,
                                   minval=-bound, maxval=bound)
            self.params.append((w, b))

        # Lane-dense padding.  v6e/v7x MXUs are 256x256, so round to 256 once the
        # natural width exceeds 128 (don't inflate genuinely tiny dims).
        max_dim = max(input_dim, hidden_units, output_dim)
        lane_mult = 256 if max_dim > 128 else 128
        self.p = _round_up(max_dim, lane_mult)
        # TODO(synk): if per-layer widths differ wildly (e.g. wide input, narrow
        # hidden), split the stack instead of padding every layer to max(dims).

        nl = len(dims)
        w_stack = jnp.zeros((nl, self.p, self.p), jnp.float32)
        b_stack = jnp.zeros((nl, 1, self.p), jnp.float32)
        for li, (w, b) in enumerate(self.params):
            fi, fo = w.shape
            w_stack = w_stack.at[li, :fi, :fo].set(w)
            b_stack = b_stack.at[li, 0, :fo].set(b)

        # bf16 weights: half the weight HBM/VMEM traffic + native MXU bf16 rate.
        # Accumulation stays f32 inside the kernel; bias stays f32.
        self.w_stack = w_stack.astype(jnp.bfloat16)
        self.b_stack = b_stack
        self.num_total_layers = nl

    def __call__(self, x):
        x = x.reshape(-1, self.input_dim).astype(jnp.float32)
        n = x.shape[0]

        tm = _choose_tm(n)
        n_pad = _round_up(_round_up(n, 8), tm)

        # Zero padding keeps math exact: padded activation columns stay 0
        # through bias(0) + ReLU and contribute nothing downstream; padded rows
        # are sliced off at the end.
        x_pad = jnp.zeros((n_pad, self.p), jnp.float32)
        x_pad = x_pad.at[:n, :self.input_dim].set(x)

        p, nl = self.p, self.num_total_layers
        need_res = _budget_resident(tm, p, nl)
        if need_res <= 40 * _MIB:
            out_pad = fused_mlp_resident(
                x_pad, self.w_stack, self.b_stack,
                tm=tm, vmem_limit=_vmem_limit(need_res))
        else:
            need_str = _budget_streamed(tm, p)
            out_pad = fused_mlp_streamed(
                x_pad, self.w_stack, self.b_stack,
                tm=tm, vmem_limit=_vmem_limit(need_str))

        return out_pad[:n, :self.output_dim]


def _reference(x, params, input_dim):
    x = x.reshape(-1, input_dim).astype(jnp.float32)
    for (w, b) in params[:-1]:
        x = jnp.maximum(x @ w + b, 0.0)
    w, b = params[-1]
    return x @ w + b


if __name__ == "__main__":
    key = jax.random.PRNGKey(0)
    k_in, k_model = jax.random.split(key)

    input_dim, output_dim, hidden_units, num_layers = 32, 16, 32, 2
    batch = 8

    model = MLPPallas(input_dim, output_dim, hidden_units, num_layers, k_model)

    # Input shaped (batch, 2, 16): forward flattens it to (-1, input_dim) = (8, 32).
    x = jax.random.normal(k_in, (batch, 2, 16), dtype=jnp.float32)

    out = jax.block_until_ready(model(x))

    ref = _reference(x, model.params, input_dim)
    assert out.shape == (batch, output_dim), out.shape
    # bf16 weights/activations inside the kernel -> slightly looser tolerance
    # vs the f32 reference (accumulation is still f32).
    assert jnp.allclose(out, ref, atol=2e-2, rtol=2e-2), float(
        jnp.max(jnp.abs(out - ref)))

    print("KERNEL_OK")
</pallas_src>

<mosaic_0001>
module attributes {stable_mosaic.version = 11 : i64} {
  func.func @_mlp_resident_kernel(%arg0: i32, %arg1: memref<8x128xf32, #tpu.memory_space<vmem>>, %arg2: memref<4x128x128xbf16, #tpu.memory_space<vmem>>, %arg3: memref<4x1x128xf32, #tpu.memory_space<vmem>>, %arg4: memref<8x128xf32, #tpu.memory_space<vmem>>, %arg5: memref<8x128xbf16, #tpu.memory_space<vmem>>) attributes {dimension_semantics = [#tpu.dimension_semantics<parallel>], iteration_bounds = array<i64: 1>, scalar_prefetch = 0 : i64, scratch_operands = 1 : i64, tpu.core_type = #tpu.core_type<tc>, window_params = [{transform_indices = @transform_0, window_bounds = array<i64: 8, 128>}, {pipeline_mode = #tpu.pipeline_mode<synchronous>, transform_indices = @transform_1, window_bounds = array<i64: 4, 128, 128>}, {pipeline_mode = #tpu.pipeline_mode<synchronous>, transform_indices = @transform_2, window_bounds = array<i64: 4, 1, 128>}, {transform_indices = @transform_3, window_bounds = array<i64: 8, 128>}]} {
    %c0 = arith.constant 0 : index
    %c0_0 = arith.constant 0 : index
    %0 = vector.load %arg1[%c0, %c0_0] : memref<8x128xf32, #tpu.memory_space<vmem>>, vector<8x128xf32>
    %1 = arith.truncf %0 : vector<8x128xf32> to vector<8x128xbf16>
    %c0_1 = arith.constant 0 : index
    %c0_2 = arith.constant 0 : index
    %c0_3 = arith.constant 0 : index
    %2 = vector.load %arg2[%c0_1, %c0_2, %c0_3] : memref<4x128x128xbf16, #tpu.memory_space<vmem>>, vector<1x128x128xbf16>
    %3 = vector.shape_cast %2 : vector<1x128x128xbf16> to vector<128x128xbf16>
    %cst = arith.constant dense<0.000000e+00> : vector<8x128xf32>
    %4 = tpu.matmul %1, %3, %cst {dimension_numbers = #tpu.dot_dimension_numbers<[1], [0], [0], [1], [0, 0, 1, 1], [], []>} : vector<8x128xbf16>, vector<128x128xbf16>, vector<8x128xf32> -> vector<8x128xf32>
    %c0_4 = arith.constant 0 : index
    %c0_5 = arith.constant 0 : index
    %c0_6 = arith.constant 0 : index
    %5 = vector.load %arg3[%c0_4, %c0_5, %c0_6] : memref<4x1x128xf32, #tpu.memory_space<vmem>>, vector<1x1x128xf32>
    %6 = vector.shape_cast %5 : vector<1x1x128xf32> to vector<1x128xf32>
    %7 = vector.broadcast %6 : vector<1x128xf32> to vector<8x128xf32>
    %8 = arith.addf %4, %7 : vector<8x128xf32>
    %cst_7 = arith.constant 0.000000e+00 : f32
    %9 = vector.broadcast %cst_7 : f32 to vector<8x128xf32>
    %10 = arith.maximumf %8, %9 : vector<8x128xf32>
    %11 = arith.truncf %10 : vector<8x128xf32> to vector<8x128xbf16>
    %c0_8 = arith.constant 0 : index
    %c0_9 = arith.constant 0 : index
    %12 = vector.load %arg5[%c0_8, %c0_9] : memref<8x128xbf16, #tpu.memory_space<vmem>>, vector<8x128xbf16>
    tpu.vector_store %arg5[%c0_8, %c0_9], %11 {strides = array<i32>} : memref<8x128xbf16, #tpu.memory_space<vmem>>, vector<8x128xbf16>,
    %c0_10 = arith.constant 0 : index
    %c0_11 = arith.constant 0 : index
    %13 = vector.load %arg5[%c0_10, %c0_11] : memref<8x128xbf16, #tpu.memory_space<vmem>>, vector<8x128xbf16>
    %c1 = arith.constant 1 : index
    %c0_12 = arith.constant 0 : index
    %c0_13 = arith.constant 0 : index
    %14 = vector.load %arg2[%c1, %c0_12, %c0_13] : memref<4x128x128xbf16, #tpu.memory_space<vmem>>, vector<1x128x128xbf16>
    %15 = vector.shape_cast %14 : vector<1x128x128xbf16> to vector<128x128xbf16>
    %cst_14 = arith.constant dense<0.000000e+00> : vector<8x128xf32>
    %16 = tpu.matmul %13, %15, %cst_14 {dimension_numbers = #tpu.dot_dimension_numbers<[1], [0], [0], [1], [0, 0, 1, 1], [], []>} : vector<8x128xbf16>, vector<128x128xbf16>, vector<8x128xf32> -> vector<8x128xf32>
    %c1_15 = arith.constant 1 : index
    %c0_16 = arith.constant 0 : index
    %c0_17 = arith.constant 0 : index
    %17 = vector.load %arg3[%c1_15, %c0_16, %c0_17] : memref<4x1x128xf32, #tpu.memory_space<vmem>>, vector<1x1x128xf32>
    %18 = vector.shape_cast %17 : vector<1x1x128xf32> to vector<1x128xf32>
    %19 = vector.broadcast %18 : vector<1x128xf32> to vector<8x128xf32>
    %20 = arith.addf %16, %19 : vector<8x128xf32>
    %cst_18 = arith.constant 0.000000e+00 : f32
    %21 = vector.broadcast %cst_18 : f32 to vector<8x128xf32>
    %22 = arith.maximumf %20, %21 : vector<8x128xf32>
    %23 = arith.truncf %22 : vector<8x128xf32> to vector<8x128xbf16>
    %c0_19 = arith.constant 0 : index
    %c0_20 = arith.constant 0 : index
    %24 = vector.load %arg5[%c0_19, %c0_20] : memref<8x128xbf16, #tpu.memory_space<vmem>>, vector<8x128xbf16>
    tpu.vector_store %arg5[%c0_19, %c0_20], %23 {strides = array<i32>} : memref<8x128xbf16, #tpu.memory_space<vmem>>, vector<8x128xbf16>,
    %c0_21 = arith.constant 0 : index
    %c0_22 = arith.constant 0 : index
    %25 = vector.load %arg5[%c0_21, %c0_22] : memref<8x128xbf16, #tpu.memory_space<vmem>>, vector<8x128xbf16>
    %c2 = arith.constant 2 : index
    %c0_23 = arith.constant 0 : index
    %c0_24 = arith.constant 0 : index
    %26 = vector.load %arg2[%c2, %c0_23, %c0_24] : memref<4x128x128xbf16, #tpu.memory_space<vmem>>, vector<1x128x128xbf16>
    %27 = vector.shape_cast %26 : vector<1x128x128xbf16> to vector<128x128xbf16>
    %cst_25 = arith.constant dense<0.000000e+00> : vector<8x128xf32>
    %28 = tpu.matmul %25, %27, %cst_25 {dimension_numbers = #tpu.dot_dimension_numbers<[1], [0], [0], [1], [0, 0, 1, 1], [], []>} : vector<8x128xbf16>, vector<128x128xbf16>, vector<8x128xf32> -> vector<8x128xf32>
    %c2_26 = arith.constant 2 : index
    %c0_27 = arith.constant 0 : index
    %c0_28 = arith.constant 0 : index
    %29 = vector.load %arg3[%c2_26, %c0_27, %c0_28] : memref<4x1x128xf32, #tpu.memory_space<vmem>>, vector<1x1x128xf32>
    %30 = vector.shape_cast %29 : vector<1x1x128xf32> to vector<1x128xf32>
    %31 = vector.broadcast %30 : vector<1x128xf32> to vector<8x128xf32>
    %32 = arith.addf %28, %31 : vector<8x128xf32>
    %cst_29 = arith.constant 0.000000e+00 : f32
    %33 = vector.broadcast %cst_29 : f32 to vector<8x128xf32>
    %34 = arith.maximumf %32, %33 : vector<8x128xf32>
    %35 = arith.truncf %34 : vector<8x128xf32> to vector<8x128xbf16>
    %c0_30 = arith.constant 0 : index
    %c0_31 = arith.constant 0 : index
    %36 = vector.load %arg5[%c0_30, %c0_31] : memref<8x128xbf16, #tpu.memory_space<vmem>>, vector<8x128xbf16>
    tpu.vector_store %arg5[%c0_30, %c0_31], %35 {strides = array<i32>} : memref<8x128xbf16, #tpu.memory_space<vmem>>, vector<8x128xbf16>,
    %c0_32 = arith.constant 0 : index
    %c0_33 = arith.constant 0 : index
    %37 = vector.load %arg5[%c0_32, %c0_33] : memref<8x128xbf16, #tpu.memory_space<vmem>>, vector<8x128xbf16>
    %c3 = arith.constant 3 : index
    %c0_34 = arith.constant 0 : index
    %c0_35 = arith.constant 0 : index
    %38 = vector.load %arg2[%c3, %c0_34, %c0_35] : memref<4x128x128xbf16, #tpu.memory_space<vmem>>, vector<1x128x128xbf16>
    %39 = vector.shape_cast %38 : vector<1x128x128xbf16> to vector<128x128xbf16>
    %cst_36 = arith.constant dense<0.000000e+00> : vector<8x128xf32>
    %40 = tpu.matmul %37, %39, %cst_36 {dimension_numbers = #tpu.dot_dimension_numbers<[1], [0], [0], [1], [0, 0, 1, 1], [], []>} : vector<8x128xbf16>, vector<128x128xbf16>, vector<8x128xf32> -> vector<8x128xf32>
    %c3_37 = arith.constant 3 : index
    %c0_38 = arith.constant 0 : index
    %c0_39 = arith.constant 0 : index
    %41 = vector.load %arg3[%c3_37, %c0_38, %c0_39] : memref<4x1x128xf32, #tpu.memory_space<vmem>>, vector<1x1x128xf32>
    %42 = vector.shape_cast %41 : vector<1x1x128xf32> to vector<1x128xf32>
    %43 = vector.broadcast %42 : vector<1x128xf32> to vector<8x128xf32>
    %44 = arith.addf %40, %43 : vector<8x128xf32>
    %c0_40 = arith.constant 0 : index
    %c0_41 = arith.constant 0 : index
    %45 = vector.load %arg4[%c0_40, %c0_41] : memref<8x128xf32, #tpu.memory_space<vmem>>, vector<8x128xf32>
    tpu.vector_store %arg4[%c0_40, %c0_41], %44 {strides = array<i32>} : memref<8x128xf32, #tpu.memory_space<vmem>>, vector<8x128xf32>,
    return
  }
  func.func @transform_0(%arg0: i32) -> (i32, i32) {
    %c0_i32 = arith.constant 0 : i32
    %c0_i32_0 = arith.constant 0 : i32
    return %arg0, %c0_i32 : i32, i32
  }
  func.func @transform_1(%arg0: i32) -> (i32, i32, i32) {
    %c0_i32 = arith.constant 0 : i32
    %c0_i32_0 = arith.constant 0 : i32
    %c0_i32_1 = arith.constant 0 : i32
    %c0_i32_2 = arith.constant 0 : i32
    return %c0_i32, %c0_i32_0, %c0_i32_1 : i32, i32, i32
  }
  func.func @transform_2(%arg0: i32) -> (i32, i32, i32) {
    %c0_i32 = arith.constant 0 : i32
    %c0_i32_0 = arith.constant 0 : i32
    %c0_i32_1 = arith.constant 0 : i32
    %c0_i32_2 = arith.constant 0 : i32
    return %c0_i32, %c0_i32_0, %c0_i32_1 : i32, i32, i32
  }
  func.func @transform_3(%arg0: i32) -> (i32, i32) {
    %c0_i32 = arith.constant 0 : i32
    %c0_i32_0 = arith.constant 0 : i32
    return %arg0, %c0_i32 : i32, i32
  }
}

</mosaic_0001>

<bundles_post_ra>
// kernel: tpu_custom_call.1
= control target key start
LH: loop header
LB: loop body
LE: loop exit
PB: predicated region body
PF: predicated region fallthrough
CT: control target
= control target key end

     0   :  { %8 = vsyncpa [#allocation4], 0  ;;  %s737_s0 = inlined_call_operand.hbm [shape: f32[8,128], index: 0, kind: input, shape index: {}]   ;;  %s738_s1 = inlined_call_operand.hbm [shape: bf16[4,128,128], index: 1, kind: input, shape index: {}]   ;;  %s739_s2 = inlined_call_operand.hbm [shape: f32[4,1,128], index: 2, kind: input, shape index: {}]   ;;  %s740_s3 = inlined_call_operand.hbm [shape: f32[8,128], index: 3, kind: output, shape index: {}]  }
   0x1   :  { %9 = vsyncpa [#allocation7], 0  ;;  %s26_s14 = sshll.u32 %s738_s1, 4  ;;  %s27_s14 = int_to_ptr.hbm [resolvable:$true] %s26_s14 }
   0x2   :  { %10 = vsyncpa [#allocation5], 0  ;;  %s697_s15 = smov [#allocation6]   ;;  %s16_s19 = sshll.u32 %s737_s0, 4  ;;  %s17_s19 = int_to_ptr.hbm [resolvable:$true] %s16_s19 }
   0x3   :  { %s28_s16 = sshll.u32 %s697_s15, 4  ;;  %s698_s20 = smov 64   ;;  %s29_s16 = int_to_ptr.vmem [resolvable:$true] %s28_s16 }
   0x4   :  { %s699_s21 = smov 4   ;;  %s700_s22 = smov [#allocation3]  }
   0x5   :  { %34 = dma.hbm_to_vmem [thread:$0]  %s27_s14, 4096, %s29_s16, [#allocation7], %s698_s20, %s698_s20, %s699_s21  }
   0x6   :  { %s18_s23 = sshll.u32 %s700_s22, 4  ;;  %s39_s26 = sshll.u32 %s739_s2, 4  ;;  %s19_s23 = int_to_ptr.vmem [resolvable:$true] %s18_s23  ;;  %s40_s26 = int_to_ptr.hbm [resolvable:$true] %s39_s26 }
   0x7   :  { %21 = dma.hbm_to_vmem [thread:$0]  %s17_s19, 128, %s19_s23, [#allocation4]  }
   0x8   :  { %s701_s1 = smov [#allocation8]   ;;  %s702_s28 = smov 16  }
   0x9   :  { %s41_s27 = sshll.u32 %s701_s1, 4  ;;  %s703_s29 = smov 1   ;;  %s42_s27 = int_to_ptr.vmem [resolvable:$true] %s41_s27 }
   0xa   :  { %47 = dma.hbm_to_vmem [thread:$0]  %s40_s26, 64, %s42_s27, [#allocation7], %s702_s28, %s702_s28, %s703_s29  }
   0xb   :  { %691 = dma.done.wait [#allocation4], 128  }
   0xc   :  { %692 = vsyncadd [#allocation4], 4294967168 }
   0xd   :  { %693 = dma.done.wait [#allocation7], 4160  }
   0xe   :  { %694 = vsyncadd [#allocation7], 4294963136  ;;  %v558_v0 = vld [vmem:[#allocation6 + $0x38] sm:$0xff]  ;;  %v557_v1 = vld [vmem:[#allocation6 + $0x30] sm:$0xff]  ;;  %s704_s0 = smov [#allocation9]   ;;  %s412_s5 = sshll.u32 %s740_s3, 4  ;;  %s413_s5 = int_to_ptr.hbm [resolvable:$true] %s412_s5 }
   0xf   :  { %130 = vmatpush.bf16.msra.mxu0 %v558_v0  ;;  %v566_v2 = vld [vmem:[#allocation6 + $0x78] sm:$0xff]  ;;  %v565_v3 = vld [vmem:[#allocation6 + $0x70] sm:$0xff]  ;;  %v556_v4 = vld [vmem:[#allocation6 + $0x28] sm:$0xff]  ;;  %s410_s2 = sshll.u32 %s704_s0, 4  ;;  %s411_s2 = int_to_ptr.vmem [resolvable:$true] %s410_s2 }
  0x10   :  { %217 = vmatpush.bf16.msra.mxu1 %v566_v2  ;;  %v564_v5 = vld [vmem:[#allocation6 + $0x68] sm:$0xff]  ;;  %v555_v6 = vld [vmem:[#allocation6 + $0x20] sm:$0xff]  ;;  %v554_v8 = vld [vmem:[#allocation6 + $0x18] sm:$0xff] }
  0x11   :  { %v563_v7 = vld [vmem:[#allocation6 + $0x60] sm:$0xff]  ;;  %v553_v9 = vld [vmem:[#allocation6 + $0x10] sm:$0xff]  ;;  %v552_v10 = vld [vmem:[#allocation6 + $0x8] sm:$0xff] }
  0x12   :  { %v551_v11 = vld [vmem:[#allocation6] sm:$0xff]  ;;  %v60_v12 = vld [vmem:[#allocation3] sm:$0xff]  ;;  %v561_v15 = vld [vmem:[#allocation6 + $0x50] sm:$0xff] }
  0x13   :  { %131 = vmatpush.bf16.msra.mxu0 %v557_v1  ;;  %v61_v13 = vpack.c.bf16 %v60_v12, %v60_v12  ;;  %v562_v14 = vld [vmem:[#allocation6 + $0x58] sm:$0xff]  ;;  %v560_v16 = vld [vmem:[#allocation6 + $0x48] sm:$0xff]  ;;  %v559_v17 = vld [vmem:[#allocation6 + $0x40] sm:$0xff] }
  0x14   :  { %218 = vmatpush.bf16.msra.mxu1 %v565_v3  ;;  %v574_v18 = vld [vmem:[#allocation6 + $0xb8] sm:$0xff]  ;;  %v573_v19 = vld [vmem:[#allocation6 + $0xb0] sm:$0xff]  ;;  %v572_v20 = vld [vmem:[#allocation6 + $0xa8] sm:$0xff] }
  0x15   :  { %304 = vmatpush.bf16.msra.mxu2 %v574_v18  ;;  %v571_v21 = vld [vmem:[#allocation6 + $0xa0] sm:$0xff]  ;;  %v570_v29 = vld [vmem:[#allocation6 + $0x98] sm:$0xff]  ;;  %v569_v30 = vld [vmem:[#allocation6 + $0x90] sm:$0xff] }
  0x16   :  { %v591_v22 = vld [vmem:[#allocation8] ss:$0 sm:$0xff]  ;;  %v568_v31 = vld [vmem:[#allocation6 + $0x88] sm:$0xff]  ;;  %v582_v33 = vld [vmem:[#allocation6 + $0xf8] sm:$0xff] }
  0x17   :  { %132 = vmatpush.bf16.msra.mxu0 %v556_v4  ;;  %v567_v32 = vld [vmem:[#allocation6 + $0x80] sm:$0xff]  ;;  %391 = vmatpush.bf16.msra.mxu3 %v582_v33  ;;  %v581_v34 = vld [vmem:[#allocation6 + $0xf0] sm:$0xff]  ;;  %v580_v35 = vld [vmem:[#allocation6 + $0xe8] sm:$0xff] }
  0x18   :  { %219 = vmatpush.bf16.msra.mxu1 %v564_v5  ;;  %v579_v36 = vld [vmem:[#allocation6 + $0xe0] sm:$0xff]  ;;  %v578_v44 = vld [vmem:[#allocation6 + $0xd8] sm:$0xff]  ;;  %v577_v45 = vld [vmem:[#allocation6 + $0xd0] sm:$0xff] }
  0x19   :  { %305 = vmatpush.bf16.msra.mxu2 %v573_v19  ;;  %v592_v37 = vld [vmem:[#allocation8 + $0x1] ss:$0 sm:$0xff]  ;;  %v576_v46 = vld [vmem:[#allocation6 + $0xc8] sm:$0xff]  ;;  %v593_v48 = vld [vmem:[#allocation8 + $0x2] ss:$0 sm:$0xff] }
  0x1a   :  { %v575_v47 = vld [vmem:[#allocation6 + $0xc0] sm:$0xff] }
  0x1b   :  { %133 = vmatpush.bf16.msra.mxu0 %v555_v6  ;;  %392 = vmatpush.bf16.msra.mxu3 %v581_v34  ;;  %v594_v55 = vld [vmem:[#allocation8 + $0x3] ss:$0 sm:$0xff] }
  0x1c   :  { %220 = vmatpush.bf16.msra.mxu1 %v563_v7 }
  0x1d   :  { %306 = vmatpush.bf16.msra.mxu2 %v572_v20 }
  0x1f   :  { %134 = vmatpush.bf16.msra.mxu0 %v554_v8  ;;  %393 = vmatpush.bf16.msra.mxu3 %v580_v35 }
  0x20   :  { %221 = vmatpush.bf16.msra.mxu1 %v562_v14 }
  0x21   :  { %307 = vmatpush.bf16.msra.mxu2 %v571_v21 }
  0x23   :  { %135 = vmatpush.bf16.msra.mxu0 %v553_v9  ;;  %394 = vmatpush.bf16.msra.mxu3 %v579_v36 }
  0x24   :  { %222 = vmatpush.bf16.msra.mxu1 %v561_v15 }
  0x25   :  { %308 = vmatpush.bf16.msra.mxu2 %v570_v29 }
  0x27   :  { %136 = vmatpush.bf16.msra.mxu0 %v552_v10  ;;  %395 = vmatpush.bf16.msra.mxu3 %v578_v44 }
  0x28   :  { %223 = vmatpush.bf16.msra.mxu1 %v560_v16 }
  0x29   :  { %309 = vmatpush.bf16.msra.mxu2 %v569_v30 }
  0x2b   :  { %137 = vmatpush.bf16.msra.mxu0 %v551_v11  ;;  %396 = vmatpush.bf16.msra.mxu3 %v577_v45 }
  0x2c   :  { %224 = vmatpush.bf16.msra.mxu1 %v559_v17 }
  0x2d   :  { %310 = vmatpush.bf16.msra.mxu2 %v568_v31 }
  0x2e   :  { %138 = vmatmul.bf16.vlgmr.msra.gmra.mxu0 %v61_v13 }
  0x2f   :  { %397 = vmatpush.bf16.msra.mxu3 %v576_v46 }
  0x31   :  { %311 = vmatpush.bf16.msra.mxu2 %v567_v32 }
  0x33   :  { %398 = vmatpush.bf16.msra.mxu3 %v575_v47 }
  0xab   :  { %v139_v23 = vpop.f32.mrf.mxu0 }
  0xac   :  { %v140_v24 = vadd.f32 %v591_v22, %v139_v23 }
  0xae   :  { %v143_v25 = vmax.f32 %v140_v24, 0.0 }
  0xb0   :  { %v144_v26 = vpack.c.bf16 %v143_v25, %v143_v25 }
  0xb2   :  { %145 = vst [vmem:[#allocation2] sm:$0xf] %v144_v26 }
  0xb3   :  { %v141_v27 = vpop.f32.mrf.mxu0 }
  0xb9   :  { %v146_v28 = vld [vmem:[#allocation2] sm:$0xf] }
  0xba   :  { %225 = vmatmul.bf16.vlgmr.msra.gmra.mxu1 %v146_v28 }
 0x137   :  { %v226_v38 = vpop.f32.mrf.mxu1 }
 0x138   :  { %v227_v39 = vadd.f32 %v592_v37, %v226_v38 }
 0x13a   :  { %v230_v40 = vmax.f32 %v227_v39, 0.0 }
 0x13c   :  { %v231_v41 = vpack.c.bf16 %v230_v40, %v230_v40 }
 0x13e   :  { %232 = vst [vmem:[#allocation2] sm:$0xf] %v231_v41 }
 0x13f   :  { %v228_v42 = vpop.f32.mrf.mxu1 }
 0x145   :  { %v233_v43 = vld [vmem:[#allocation2] sm:$0xf] }
 0x146   :  { %312 = vmatmul.bf16.vlgmr.msra.gmra.mxu2 %v233_v43 }
 0x1c9   :  { %v313_v49 = vpop.f32.mrf.mxu2 }
 0x1ca   :  { %v314_v50 = vadd.f32 %v593_v48, %v313_v49 }
 0x1cc   :  { %v317_v51 = vmax.f32 %v314_v50, 0.0 }
 0x1ce   :  { %v318_v52 = vpack.c.bf16 %v317_v51, %v317_v51 }
 0x1d0   :  { %319 = vst [vmem:[#allocation2] sm:$0xf] %v318_v52 }
 0x1d1   :  { %v315_v53 = vpop.f32.mrf.mxu2 }
 0x1d7   :  { %v320_v54 = vld [vmem:[#allocation2] sm:$0xf] }
 0x1d8   :  { %399 = vmatmul.bf16.vlgmr.msra.gmra.mxu3 %v320_v54 }
 0x25b   :  { %v400_v56 = vpop.f32.mrf.mxu3 }
 0x25c   :  { %v401_v57 = vadd.f32 %v594_v55, %v400_v56 }
 0x25e   :  { %404 = vst [vmem:[#allocation9] sm:$0xff] %v401_v57 }
 0x25f   :  { %415 = dma.vmem_to_hbm [thread:$0]  %s411_s2, 128, %s413_s5, [#allocation5]  }
 0x263   :  { %v402_v58 = vpop.f32.mrf.mxu3 }
 0x264   :  { %695 = dma.done.wait [#allocation5], 128  }
 0x265   :  { %696 = vsyncadd [#allocation5], 4294967168 }
 0x266   :  { %420 = vsyncpa [#allocation4], 1 }
 0x267   :  { %421 = vsyncpa [#allocation7], 1 }
 0x268   :  { %422 = vsyncpa [#allocation5], 1 }

</bundles_post_ra>
